<compile_context>
chip_gen: v6e
topology: v6e:2x2x1
jax: 0.10.0
libtpu: 0.0.40
codegen_flags: <defaults>
</compile_context>

<pallas_src>
import jax
import jax.numpy as jnp
from jax.experimental import pallas as pl
from jax.experimental.pallas import tpu as pltpu


def _linear_columns_kernel(x_ref, w_ref, b_ref, o_ref):
    # x_ref: (TB, K=x1*x2)       lane-dense batch tile (one contiguous DMA)
    # w_ref: (K, N=x1*out_dim)   block-diagonal weight, resident across steps
    # b_ref: (1, N)              lane-packed bias, resident
    # o_ref: (TB, N)             lane-dense output tile
    out = jnp.dot(x_ref[...], w_ref[...], preferred_element_type=jnp.float32)
    out = out + b_ref[...]                      # broadcast over batch rows (VPU)
    o_ref[...] = out.astype(o_ref.dtype)        # single unmasked lane-dense store


def _round_up(v, m):
    return (v + m - 1) // m * m


def _tpu_kind():
    try:
        return jax.devices()[0].device_kind.lower()
    except Exception:
        return ""


def _vmem_budgets(kind):
    """(tile-picking budget, vmem_limit_bytes) per TPU generation."""
    if "v7" in kind:                              # 64 MiB VMEM per TensorCore
        return 28 << 20, 48 << 20
    if any(t in kind for t in ("v4", "v5", "v6")):  # 128 MiB physical VMEM
        return 64 << 20, 96 << 20
    return 24 << 20, 32 << 20                     # unknown chip: conservative


def _pick_batch_tile(b_flat, k_dim, n_dim, itemsize, budget_bytes):
    """Largest multiple-of-8 batch tile whose double-buffered footprint fits."""
    lane_k = _round_up(k_dim, 128)
    lane_n = _round_up(n_dim, 128)
    # Per batch row: lane-dense x tile + output tile, double-buffered.
    per_row = 2 * (lane_k + lane_n) * itemsize
    # Resident block-diag weight + bias (Pallas still double-buffers constant
    # blocks; at these sizes that is negligible, so we don't use pl.Buffered).
    resident = 2 * (_round_up(k_dim, 8) * lane_n + 8 * lane_n) * itemsize
    avail = budget_bytes - resident
    if avail < per_row * 8:
        # TODO(synk): add an x1-tiled weight grid axis for weights that outgrow
        # VMEM instead of failing fast (reached first on v7x's 64 MiB VMEM).
        raise ValueError(
            "LinearColumns block-diagonal weight does not fit the VMEM budget "
            f"({resident} resident bytes vs {budget_bytes} budget); tile the "
            "weight along x1 instead."
        )
    tb = max(8, min(4096, (avail // per_row) // 8 * 8))
    return b_flat if b_flat <= tb else int(tb)


def linear_columns(x, weight, bias, *, batch_tile=None):
    """Per-column linear layer: out[..., i, :] = x[..., i, :] @ weight[i] + bias[i].

    x:      (batch..., x1, x2)
    weight: (x1, x2, out_dim)
    bias:   (x1, out_dim)
    returns (batch..., x1, out_dim)
    """
    *batch_dims, x1, x2 = x.shape
    x1_w, x2_w, out_dim = weight.shape
    assert x1 == x1_w and x2 == x2_w, "Input dimension mismatch"

    b_flat = 1
    for d in batch_dims:
        b_flat *= int(d)

    k_dim = x1 * x2
    n_dim = x1 * out_dim

    kind = _tpu_kind()
    budget_bytes, vmem_limit = _vmem_budgets(kind)
    itemsize = jnp.dtype(x.dtype).itemsize

    tb = batch_tile or _pick_batch_tile(b_flat, k_dim, n_dim, itemsize, budget_bytes)

    # v7x megacore: keep at least two grid steps so both TensorCores get work.
    if "v7" in kind and b_flat >= 16:
        tb = min(tb, _round_up(pl.cdiv(b_flat, 2), 8))

    grid_b = pl.cdiv(b_flat, tb)

    # Free, contiguous reshapes only — no HBM transposes on the way in or out.
    x2d = x.reshape(b_flat, k_dim)        # lane-dense: one contiguous DMA per tile
    bias2d = bias.reshape(1, n_dim)
    # Block-diagonal weight: block (i, i) == weight[i].  Built once at trace
    # time; grows the weight by x1x, which the VMEM guard above accounts for.
    eye = jnp.eye(x1, dtype=weight.dtype)
    w_bd = jnp.einsum("ij,iko->ikjo", eye, weight).reshape(k_dim, n_dim)

    out2d = pl.pallas_call(
        _linear_columns_kernel,
        out_shape=jax.ShapeDtypeStruct((b_flat, n_dim), x.dtype),
        grid_spec=pltpu.PrefetchScalarGridSpec(
            num_scalar_prefetch=0,
            grid=(grid_b,),
            in_specs=[
                # Lane-dense batch tile of x.
                pl.BlockSpec((tb, k_dim), lambda b: (b, 0)),
                # Block-diag weight / bias: constant block index -> resident.
                pl.BlockSpec((k_dim, n_dim), lambda b: (0, 0)),
                pl.BlockSpec((1, n_dim), lambda b: (0, 0)),
            ],
            out_specs=pl.BlockSpec((tb, n_dim), lambda b: (b, 0)),
        ),
        compiler_params=pltpu.CompilerParams(
            # Batch-tile axis is independent -> megacore sharding on v7x.
            dimension_semantics=("parallel",),
            vmem_limit_bytes=vmem_limit,
        ),
    )(x2d, w_bd, bias2d)

    return out2d.reshape(*batch_dims, x1, out_dim)


if __name__ == "__main__":
    # Small shapes consistent with the module: batch=2, x1=4 columns,
    # x2=32 features per column, out_dim=32  (K = N = 128 -> lane-dense).
    batch, x1_dim, x2_dim, out_dim = 2, 4, 32, 32

    key = jax.random.PRNGKey(0)
    kx, kw, kb = jax.random.split(key, 3)
    x = jax.random.normal(kx, (batch, x1_dim, x2_dim), dtype=jnp.float32)
    weight = jax.random.normal(kw, (x1_dim, x2_dim, out_dim), dtype=jnp.float32)
    bias = jax.random.normal(kb, (x1_dim, out_dim), dtype=jnp.float32)

    out = linear_columns(x, weight, bias)
    out = jax.block_until_ready(out)

    # Reference check (plain JAX einsum, same semantics as the torch module).
    ref = jnp.einsum("bik,iko->bio", x, weight) + bias[None]
    assert out.shape == (batch, x1_dim, out_dim)
    assert jnp.allclose(out, ref, atol=1e-4, rtol=1e-4)

    print("KERNEL_OK")
</pallas_src>

<mosaic_0001>
module attributes {stable_mosaic.version = 11 : i64} {
  func.func @_linear_columns_kernel(%arg0: i32, %arg1: memref<2x128xf32, #tpu.memory_space<vmem>>, %arg2: memref<128x128xf32, #tpu.memory_space<vmem>>, %arg3: memref<1x128xf32, #tpu.memory_space<vmem>>, %arg4: memref<2x128xf32, #tpu.memory_space<vmem>>) attributes {dimension_semantics = [#tpu.dimension_semantics<parallel>], iteration_bounds = array<i64: 1>, scalar_prefetch = 0 : i64, scratch_operands = 0 : i64, tpu.core_type = #tpu.core_type<tc>, window_params = [{transform_indices = @transform_0, window_bounds = array<i64: 2, 128>}, {pipeline_mode = #tpu.pipeline_mode<synchronous>, transform_indices = @transform_1, window_bounds = array<i64: 128, 128>}, {pipeline_mode = #tpu.pipeline_mode<synchronous>, transform_indices = @transform_2, window_bounds = array<i64: 1, 128>}, {transform_indices = @transform_3, window_bounds = array<i64: 2, 128>}]} {
    %c0 = arith.constant 0 : index
    %c0_0 = arith.constant 0 : index
    %0 = vector.load %arg1[%c0, %c0_0] : memref<2x128xf32, #tpu.memory_space<vmem>>, vector<2x128xf32>
    %c0_1 = arith.constant 0 : index
    %c0_2 = arith.constant 0 : index
    %1 = vector.load %arg2[%c0_1, %c0_2] : memref<128x128xf32, #tpu.memory_space<vmem>>, vector<128x128xf32>
    %cst = arith.constant dense<0.000000e+00> : vector<2x128xf32>
    %2 = tpu.matmul %0, %1, %cst {dimension_numbers = #tpu.dot_dimension_numbers<[1], [0], [0], [1], [0, 0, 1, 1], [], []>} : vector<2x128xf32>, vector<128x128xf32>, vector<2x128xf32> -> vector<2x128xf32>
    %c0_3 = arith.constant 0 : index
    %c0_4 = arith.constant 0 : index
    %3 = vector.load %arg3[%c0_3, %c0_4] : memref<1x128xf32, #tpu.memory_space<vmem>>, vector<1x128xf32>
    %4 = vector.broadcast %3 : vector<1x128xf32> to vector<2x128xf32>
    %5 = arith.addf %2, %4 : vector<2x128xf32>
    %c0_5 = arith.constant 0 : index
    %c0_6 = arith.constant 0 : index
    %6 = vector.load %arg4[%c0_5, %c0_6] : memref<2x128xf32, #tpu.memory_space<vmem>>, vector<2x128xf32>
    tpu.vector_store %arg4[%c0_5, %c0_6], %5 {strides = array<i32>} : memref<2x128xf32, #tpu.memory_space<vmem>>, vector<2x128xf32>,
    return
  }
  func.func @transform_0(%arg0: i32) -> (i32, i32) {
    %c0_i32 = arith.constant 0 : i32
    %c0_i32_0 = arith.constant 0 : i32
    return %arg0, %c0_i32 : i32, i32
  }
  func.func @transform_1(%arg0: i32) -> (i32, i32) {
    %c0_i32 = arith.constant 0 : i32
    %c0_i32_0 = arith.constant 0 : i32
    %c0_i32_1 = arith.constant 0 : i32
    return %c0_i32, %c0_i32_0 : i32, i32
  }
  func.func @transform_2(%arg0: i32) -> (i32, i32) {
    %c0_i32 = arith.constant 0 : i32
    %c0_i32_0 = arith.constant 0 : i32
    %c0_i32_1 = arith.constant 0 : i32
    return %c0_i32, %c0_i32_0 : i32, i32
  }
  func.func @transform_3(%arg0: i32) -> (i32, i32) {
    %c0_i32 = arith.constant 0 : i32
    %c0_i32_0 = arith.constant 0 : i32
    return %arg0, %c0_i32 : i32, i32
  }
}

</mosaic_0001>

<bundles_post_ra>
// kernel: tpu_custom_call.1
= control target key start
LH: loop header
LB: loop body
LE: loop exit
PB: predicated region body
PF: predicated region fallthrough
CT: control target
= control target key end

     0   :  { %8 = vsyncpa [#allocation3], 0  ;;  %s317_s0 = inlined_call_operand.hbm [shape: f32[2,128], index: 0, kind: input, shape index: {}]   ;;  %s318_s1 = inlined_call_operand.hbm [shape: f32[128,128], index: 1, kind: input, shape index: {}]   ;;  %s319_s2 = inlined_call_operand.vmem [shape: f32[1,128], index: 2, kind: input, shape index: {}]   ;;  %s320_s3 = inlined_call_operand.hbm [shape: f32[2,128], index: 3, kind: output, shape index: {}]  }
   0x1   :  { %9 = vsyncpa [#allocation6], 0 }
   0x2   :  { %10 = vsyncpa [#allocation4], 0  ;;  %s278_s12 = smov [#allocation2]   ;;  %s279_s14 = smov [#allocation5]  }
   0x3   :  { %s17_s13 = sshll.u32 %s278_s12, 4  ;;  %s26_s15 = sshll.u32 %s279_s14, 4  ;;  %s18_s13 = int_to_ptr.vmem [resolvable:$true] %s17_s13  ;;  %s27_s15 = int_to_ptr.vmem [resolvable:$true] %s26_s15 }
   0x4   :  { %s220_s16 = scalar_lea.vmem %s18_s13, 32  ;;  %p225_p1 = scmp.lt.s32.totalorder %s18_s13, %s18_s13 }
   0x5   :  { %p221_p0 = scmp.ne.s32.totalorder %s18_s13, %s220_s16  ;;  %p226_p2 = scmp.lt.s32.totalorder %s220_s16, %s220_s16 }
   0x7   :  { %p227_p3 = por %p226_p2, %p225_p1 }
   0x9   :  { %p228_p4 = pnand %p227_p3, %p221_p0 }
   0xb   :  { %231 = shalt.err (!%p228_p4)
}
   0xc   :  { %20 = dma.hbm_to_vmem [thread:$0]  %s317_s0, 32, %s18_s13, [#allocation3]  }
   0xd   :  { %s240_s19 = scalar_lea.vmem %s27_s15, 2048  ;;  %p245_p6 = scmp.lt.s32.totalorder %s27_s15, %s27_s15 }
   0xe   :  { %p241_p5 = scmp.ne.s32.totalorder %s27_s15, %s240_s19  ;;  %p246_p7 = scmp.lt.s32.totalorder %s240_s19, %s240_s19 }
  0x10   :  { %p247_p8 = por %p246_p7, %p245_p6 }
  0x12   :  { %p248_p9 = pnand %p247_p8, %p241_p5 }
  0x14   :  { %251 = shalt.err (!%p248_p9)
}
  0x15   :  { %s280_s20 = smov 128   ;;  %s281_s21 = smov 8  }
  0x16   :  { %32 = dma.hbm_to_vmem [thread:$0]  %s318_s1, 2048, %s27_s15, [#allocation6], %s280_s20, %s280_s20, %s281_s21  }
  0x17   :  { %272 = dma.done.wait [#allocation3], 32  }
  0x18   :  { %273 = vsyncadd [#allocation3], 4294967264 }
  0x19   :  { %274 = dma.done.wait [#allocation6], 2048  }
  0x1a   :  { %275 = vsyncadd [#allocation6], 4294965248  ;;  %v282_v0 = vmov 0.0   ;;  %vm283_vm0 = vmmov 0   ;;  %v57_v1 = vld [vmem:[#allocation5 + $0x78] sm:$0xff]  ;;  %v56_v2 = vld [vmem:[#allocation5 + $0x70] sm:$0xff] }
  0x1b   :  { %170 = vmatprep.subr.mxu0 %v282_v0  ;;  %202 = vmatprep.mubr.msk.f32.mxu0 %vm283_vm0, %v282_v0  ;;  %v55_v3 = vld [vmem:[#allocation5 + $0x68] sm:$0xff]  ;;  %v54_v4 = vld [vmem:[#allocation5 + $0x60] sm:$0xff]  ;;  %v53_v5 = vld [vmem:[#allocation5 + $0x58] sm:$0xff]  ;;  %s284_s24 = smov [#allocation7]  }
  0x1c   :  { %171 = vmatpush3.msra.mxu0 %v57_v1  ;;  %v52_v6 = vld [vmem:[#allocation5 + $0x50] sm:$0xff]  ;;  %v51_v7 = vld [vmem:[#allocation5 + $0x48] sm:$0xff]  ;;  %v50_v8 = vld [vmem:[#allocation5 + $0x40] sm:$0xff]  ;;  %s142_s25 = sshll.u32 %s284_s24, 4  ;;  %s143_s25 = int_to_ptr.vmem [resolvable:$true] %s142_s25 }
  0x1d   :  { %172 = vmatprep.subr.mxu0 %v282_v0  ;;  %v49_v9 = vld [vmem:[#allocation5 + $0x38] sm:$0xff]  ;;  %v48_v10 = vld [vmem:[#allocation5 + $0x30] sm:$0xff]  ;;  %v47_v11 = vld [vmem:[#allocation5 + $0x28] sm:$0xff]  ;;  %s252_s26 = scalar_lea.vmem %s143_s25, 32  ;;  %p257_p11 = scmp.lt.s32.totalorder %s143_s25, %s143_s25 }
  0x1e   :  { %173 = vmatpush3.msra.mxu0 %v56_v2  ;;  %v46_v12 = vld [vmem:[#allocation5 + $0x20] sm:$0xff]  ;;  %v45_v13 = vld [vmem:[#allocation5 + $0x18] sm:$0xff]  ;;  %v44_v14 = vld [vmem:[#allocation5 + $0x10] sm:$0xff]  ;;  %p253_p10 = scmp.ne.s32.totalorder %s143_s25, %s252_s26  ;;  %p258_p12 = scmp.lt.s32.totalorder %s252_s26, %s252_s26 }
  0x1f   :  { %174 = vmatprep.subr.mxu0 %v282_v0  ;;  %v43_v15 = vld [vmem:[#allocation5 + $0x8] sm:$0xff]  ;;  %v42_v16 = vld [vmem:[#allocation5] sm:$0xff]  ;;  %v41_v17 = vld [vmem:[#allocation2] sm:$0x3] }
  0x20   :  { %175 = vmatpush3.msra.mxu0 %v55_v3  ;;  %v152_v18 = vld [vmem:[%s319_s2] ss:$0 sm:$0xff]  ;;  %p259_p13 = por %p258_p12, %p257_p11 }
  0x21   :  { %176 = vmatprep.subr.mxu0 %v282_v0 }
  0x22   :  { %177 = vmatpush3.msra.mxu0 %v54_v4  ;;  %p260_p0 = pnand %p259_p13, %p253_p10 }
  0x23   :  { %178 = vmatprep.subr.mxu0 %v282_v0 }
  0x24   :  { %179 = vmatpush3.msra.mxu0 %v53_v5 }
  0x25   :  { %180 = vmatprep.subr.mxu0 %v282_v0 }
  0x26   :  { %181 = vmatpush3.msra.mxu0 %v52_v6 }
  0x27   :  { %182 = vmatprep.subr.mxu0 %v282_v0 }
  0x28   :  { %183 = vmatpush3.msra.mxu0 %v51_v7 }
  0x29   :  { %184 = vmatprep.subr.mxu0 %v282_v0 }
  0x2a   :  { %185 = vmatpush3.msra.mxu0 %v50_v8 }
  0x2b   :  { %186 = vmatprep.subr.mxu0 %v282_v0 }
  0x2c   :  { %187 = vmatpush3.msra.mxu0 %v49_v9 }
  0x2d   :  { %188 = vmatprep.subr.mxu0 %v282_v0 }
  0x2e   :  { %189 = vmatpush3.msra.mxu0 %v48_v10 }
  0x2f   :  { %190 = vmatprep.subr.mxu0 %v282_v0 }
  0x30   :  { %191 = vmatpush3.msra.mxu0 %v47_v11 }
  0x31   :  { %192 = vmatprep.subr.mxu0 %v282_v0 }
  0x32   :  { %193 = vmatpush3.msra.mxu0 %v46_v12 }
  0x33   :  { %194 = vmatprep.subr.mxu0 %v282_v0 }
  0x34   :  { %195 = vmatpush3.msra.mxu0 %v45_v13 }
  0x35   :  { %196 = vmatprep.subr.mxu0 %v282_v0 }
  0x36   :  { %197 = vmatpush3.msra.mxu0 %v44_v14 }
  0x37   :  { %198 = vmatprep.subr.mxu0 %v282_v0 }
  0x38   :  { %199 = vmatpush3.msra.mxu0 %v43_v15 }
  0x39   :  { %200 = vmatprep.subr.mxu0 %v282_v0 }
  0x3a   :  { %201 = vmatpush3.msra.mxu0 %v42_v16 }
  0x3b   :  { %203 = vmatmul.mubr.f32.vlgmr.msra.gmra.mxu0 %v41_v17 }
  0xfb   :  { %v131_v19 = vpop.f32.mrf.mxu0 }
  0xfc   :  { %v132_v20 = vadd.f32 %v152_v18, %v131_v19 }
  0xfd   :  { %v204_v21 = vpop.f32.mrf.mxu0 }
  0xfe   :  { %135 = vst [vmem:[#allocation7] sm:$0x3] %v132_v20 }
  0xff   :  { %263 = shalt.err (!%p260_p0)
}
 0x100   :  { %145 = dma.vmem_to_hbm [thread:$0]  %s143_s25, 32, %s320_s3, [#allocation4]  }
 0x101   :  { %276 = dma.done.wait [#allocation4], 32  }
 0x102   :  { %277 = vsyncadd [#allocation4], 4294967264 }
 0x103   :  { %149 = vsyncpa [#allocation3], 1 }
 0x104   :  { %150 = vsyncpa [#allocation6], 1 }
 0x105   :  { %151 = vsyncpa [#allocation4], 1 }

</bundles_post_ra>
